<compile_context>
chip_gen: v7x
topology: tpu7x:2x2x1
jax: 0.10.0
libtpu: 0.0.40
codegen_flags: <defaults>
</compile_context>

<pallas_src>
import math

import jax
import jax.numpy as jnp
from jax.experimental import pallas as pl
from jax.experimental.pallas import tpu as pltpu

# ----------------------------- static config --------------------------------
Z_DIM = 32
AUDIO_DIM = 16
NUM_EMOTIONS = 6                      # stand-in for len(Emotion)
CANVAS_SIZE = 16
PATH_DEPTH = 5
SEGMENTS = 2 ** PATH_DEPTH            # 32
ONE_PATH_POINTS = SEGMENTS * 3 * 2    # 192
MAX_FIGS_TO_ADD = 3
BASE_FIGS = 2
MAX_FIGS = BASE_FIGS + MAX_FIGS_TO_ADD            # 5
NO_RANDOM_IN = AUDIO_DIM + NUM_EMOTIONS           # 22  (d_model of the transformer)
IN_FEATURES = Z_DIM + NO_RANDOM_IN                # 54
# USE_PALETTE_PREDICTOR=True, NEED_STROKE=False, RANDOM_DEFORMATION=True:
PARAMS_PER_PATH = 2 + 2 + 1 + 1                   # center(2)+radius(2)+angle(1)+fill(1)
OUT_DIM = 3 * PARAMS_PER_PATH                     # 18
FF_DIM = 2048                                     # TransformerEncoderLayer default
DEFORM_IN = IN_FEATURES + MAX_FIGS                # 59
N_PALETTE = 4
LN_EPS = 1e-5

FIG_OUT_LANES = 128                               # 18 shape params + pad -> lane-dense store
BATCH_OUT_LANES = 128                             # 12 palette + 1 argmax + pad


# ---------------------- packed small-parameter slab layout --------------------
# All tiny parameters live in one contiguous f32 [SLAB_ROWS, 32] slab; each block is
# 8-sublane aligned so in-kernel static slices stay aligned loads.
_SMALL_PARAMS = (
    ("pal_w_z",  (Z_DIM, N_PALETTE * 3)),
    ("pal_w_na", (NO_RANDOM_IN, N_PALETTE * 3)),
    ("pal_b",    (1, N_PALETTE * 3)),
    ("w_attn",   (NO_RANDOM_IN, NO_RANDOM_IN)),
    ("b_attn",   (1, NO_RANDOM_IN)),
    ("ln1_g",    (1, NO_RANDOM_IN)),
    ("ln1_b",    (1, NO_RANDOM_IN)),
    ("b2",       (1, NO_RANDOM_IN)),
    ("ln2_g",    (1, NO_RANDOM_IN)),
    ("ln2_b",    (1, NO_RANDOM_IN)),
    ("figcnt_w", (NO_RANDOM_IN, MAX_FIGS_TO_ADD)),
    ("figcnt_b", (1, MAX_FIGS_TO_ADD)),
    ("wd_z",     (Z_DIM, OUT_DIM)),
    ("wd_na",    (NO_RANDOM_IN, OUT_DIM)),
    ("wd_oh",    (MAX_FIGS, OUT_DIM)),
    ("bd",       (1, OUT_DIM)),
)
SLAB_LANES = 32


def _build_slab_layout():
    offsets, row = {}, 0
    for name, (nrows, ncols) in _SMALL_PARAMS:
        offsets[name] = (row, nrows, ncols)
        row += ((nrows + 7) // 8) * 8        # 8-sublane aligned blocks
    return offsets, row


_SLAB_OFF, SLAB_ROWS = _build_slab_layout()


# ------------------------------ kernel helpers -------------------------------
def _layernorm(x, g, b):
    mean = jnp.mean(x, axis=-1, keepdims=True)
    var = jnp.mean((x - mean) ** 2, axis=-1, keepdims=True)
    return (x - mean) * jax.lax.rsqrt(var + LN_EPS) * g + b


# ------------------------------ fused Pallas kernel ---------------------------
def _fused_kernel(xna_ref, noise_ref, mynoise_ref, slab_ref, w1_ref, b1_ref, w2t_ref,
                  fig_ref, batch_ref):
    B = xna_ref.shape[0]
    rows = mynoise_ref.shape[0]                  # B * MAX_FIGS, figure-major rows

    def P(name):
        r, nrows, ncols = _SLAB_OFF[name]
        return slab_ref[r:r + nrows, :ncols]

    xna = xna_ref[...]                           # [B, 22]  (audio | emotions), f32
    noise = noise_ref[...]                       # [B, 32]

    # ---- palette predictor stand-in: sigmoid(linear(noise, audio, emotions)) ----
    pal = jax.nn.sigmoid(
        jnp.dot(noise, P("pal_w_z"), preferred_element_type=jnp.float32)
        + jnp.dot(xna, P("pal_w_na"), preferred_element_type=jnp.float32)
        + P("pal_b"))                                                    # [B, 12]

    # ---- nn.TransformerEncoderLayer (seq_len=1, nhead=1, eval, post-norm) ----
    # One token -> softmax(1x1)=1 -> attention == value@out_proj; Wv@Wo folded offline.
    attn = jnp.dot(xna, P("w_attn"), preferred_element_type=jnp.float32) + P("b_attn")
    h = _layernorm(xna + attn, P("ln1_g"), P("ln1_b"))
    ff = jnp.maximum(
        jnp.dot(h.astype(jnp.bfloat16), w1_ref[...],
                preferred_element_type=jnp.float32) + b1_ref[...], 0.0)   # [B, 2048]
    # w2 stored lane-dense as [22, 2048]; contract the lane dims (q@k^T style).
    ff2 = jax.lax.dot_general(
        ff.astype(jnp.bfloat16), w2t_ref[...],
        dimension_numbers=(((1,), (1,)), ((), ())),
        preferred_element_type=jnp.float32) + P("b2")                     # [B, 22]
    tr_out = _layernorm(h + ff2, P("ln2_g"), P("ln2_b"))                  # [B, 22]

    # ---- figures_count_model_to_add: argmax(logits) (softmax is monotone) ----
    logits = jnp.dot(tr_out, P("figcnt_w"),
                     preferred_element_type=jnp.float32) + P("figcnt_b")  # [B, 3]
    l0, l1, l2 = logits[:, 0:1], logits[:, 1:2], logits[:, 2:3]
    idx = jnp.where(l1 > l0, 1.0, 0.0)
    idx = jnp.where(l2 > jnp.maximum(l0, l1), 2.0, idx)                   # [B, 1]

    # ---- figure_deformation_predictor (4 linears, eval dropout -> folded affine) ----
    # Rows are figure-major: row = f*B + b.
    #   per-batch term  : broadcast via sublane concat (no rep matmul / iota / div)
    #   one-hot term    : onehot @ wd_oh == wd_oh[f] broadcast over batch rows
    per_b = jnp.dot(tr_out, P("wd_na"), preferred_element_type=jnp.float32) + P("bd")
    per_b_rows = jnp.concatenate([per_b] * MAX_FIGS, axis=0)              # [rows, 18]
    wd_oh = P("wd_oh")                                                    # [5, 18]
    oh_rows = jnp.concatenate(
        [jnp.broadcast_to(wd_oh[f:f + 1, :], (B, OUT_DIM)) for f in range(MAX_FIGS)],
        axis=0)                                                           # [rows, 18]
    sp = jax.nn.sigmoid(
        jnp.dot(mynoise_ref[...], P("wd_z"), preferred_element_type=jnp.float32)
        + per_b_rows + oh_rows)                                           # [rows, 18]

    # ---- lane-dense packed output slabs (value at lane 0, zero pad to 128) ----
    fig_ref[...] = jnp.concatenate(
        [sp, jnp.zeros((rows, FIG_OUT_LANES - OUT_DIM), jnp.float32)], axis=-1)
    batch_ref[...] = jnp.concatenate(
        [pal, idx, jnp.zeros((B, BATCH_OUT_LANES - N_PALETTE * 3 - 1), jnp.float32)],
        axis=-1)


def fused_generator(xna, noise, my_noise, p):
    B = xna.shape[0]
    rows = B * MAX_FIGS
    vmem = pl.BlockSpec(memory_space=pltpu.MemorySpace.VMEM)

    flops = (4 * B * NO_RANDOM_IN * FF_DIM                         # two FF matmuls
             + 2 * B * (Z_DIM + NO_RANDOM_IN) * N_PALETTE * 3
             + 2 * B * NO_RANDOM_IN * (NO_RANDOM_IN + MAX_FIGS_TO_ADD + OUT_DIM)
             + 2 * rows * Z_DIM * OUT_DIM)
    bytes_accessed = (p["w1"].size * 2 + p["w2t"].size * 2 + p["b1"].size * 4
                      + p["slab"].size * 4
                      + (xna.size + noise.size + my_noise.size) * 4
                      + (rows * FIG_OUT_LANES + B * BATCH_OUT_LANES) * 4)
    transcendentals = B * (N_PALETTE * 3 + 4) + rows * OUT_DIM

    return pl.pallas_call(
        _fused_kernel,
        out_shape=(jax.ShapeDtypeStruct((rows, FIG_OUT_LANES), jnp.float32),
                   jax.ShapeDtypeStruct((B, BATCH_OUT_LANES), jnp.float32)),
        in_specs=[vmem] * 7,
        out_specs=(vmem, vmem),
        cost_estimate=pl.CostEstimate(flops=flops,
                                      transcendentals=transcendentals,
                                      bytes_accessed=bytes_accessed),
    )(xna, noise, my_noise, p["slab"], p["w1"], p["b1"], p["w2t"])


# ------------------------------ parameter init --------------------------------
def _lin_init(key, fin, fout):
    kw, kb = jax.random.split(key)
    s = 1.0 / math.sqrt(fin)
    w = jax.random.uniform(kw, (fin, fout), jnp.float32, -s, s)
    b = jax.random.uniform(kb, (1, fout), jnp.float32, -s, s)
    return w, b


def init_params(key):
    ks = jax.random.split(key, 10)
    d = NO_RANDOM_IN

    # transformer encoder layer (only V/out projections matter at seq_len == 1)
    wv, bv = _lin_init(ks[0], d, d)
    wo, bo = _lin_init(ks[1], d, d)
    w1, b1 = _lin_init(ks[2], d, FF_DIM)
    w2, b2 = _lin_init(ks[3], FF_DIM, d)

    figcnt_w, figcnt_b = _lin_init(ks[4], d, MAX_FIGS_TO_ADD)

    # figure_deformation_predictor: Linear/Dropout x3 -> Linear -> Sigmoid.
    # No nonlinearity between linears and dropout is identity in eval, so the four
    # linears fold exactly into one [59, 18] affine map.
    dw1, db1 = _lin_init(ks[5], DEFORM_IN, 512)
    dw2, db2 = _lin_init(ks[6], 512, 256)
    dw3, db3 = _lin_init(ks[7], 256, 64)
    dw4, db4 = _lin_init(ks[8], 64, OUT_DIM)
    wd = dw1 @ dw2 @ dw3 @ dw4                                    # [59, 18]
    bd = ((db1 @ dw2 + db2) @ dw3 + db3) @ dw4 + db4              # [1, 18]

    # TODO(synk): get_palette_predictor() is an external pretrained module with an
    # unknown architecture; a deterministic linear + sigmoid stand-in is used.
    pal_w, pal_b = _lin_init(ks[9], Z_DIM + AUDIO_DIM + NUM_EMOTIONS, N_PALETTE * 3)

    small = dict(
        pal_w_z=pal_w[:Z_DIM], pal_w_na=pal_w[Z_DIM:], pal_b=pal_b,
        w_attn=wv @ wo, b_attn=bv @ wo + bo,
        ln1_g=jnp.ones((1, d), jnp.float32), ln1_b=jnp.zeros((1, d), jnp.float32),
        b2=b2,
        ln2_g=jnp.ones((1, d), jnp.float32), ln2_b=jnp.zeros((1, d), jnp.float32),
        figcnt_w=figcnt_w, figcnt_b=figcnt_b,
        wd_z=wd[:Z_DIM], wd_na=wd[Z_DIM:Z_DIM + d], wd_oh=wd[Z_DIM + d:], bd=bd,
    )
    slab = jnp.zeros((SLAB_ROWS, SLAB_LANES), jnp.float32)
    for name, (nrows, ncols) in _SMALL_PARAMS:
        r = _SLAB_OFF[name][0]
        slab = slab.at[r:r + nrows, :ncols].set(small[name].astype(jnp.float32))

    return dict(
        slab=slab,
        w1=w1.astype(jnp.bfloat16),            # [22, 2048] lane-dense
        b1=b1,                                 # [1, 2048] f32
        w2t=jnp.transpose(w2).astype(jnp.bfloat16),   # [22, 2048] lane-dense (pre-T)
    )


# ------------------------------ geometry glue ---------------------------------
def create_oval(center, radius, angle, depth):
    """Cubic-Bezier ellipse approximation.

    center [..., 2], radius [..., 2], angle [..., 1] -> flat points [..., 192]
    laid out as [p0, c0a, c0b, p1, c1a, c1b, ...] * (x, y) per segment.
    """
    # TODO(synk): exact `create_oval` is an external helper; this re-implements
    # the standard cubic-Bezier ellipse construction it approximates.
    n = 2 ** depth
    dt = 2.0 * math.pi / n
    t = jnp.arange(n, dtype=jnp.float32) * dt
    k = (4.0 / 3.0) * math.tan(dt / 4.0)
    rx, ry = radius[..., 0:1], radius[..., 1:2]          # [B,F,1]
    ct, st = jnp.cos(t), jnp.sin(t)                      # [n]
    ct2, st2 = jnp.cos(t + dt), jnp.sin(t + dt)
    ax, ay = rx * ct, ry * st                            # on-curve point
    bx, by = rx * ct - k * rx * st, ry * st + k * ry * ct      # out-control
    cx, cy = rx * ct2 + k * rx * st2, ry * st2 - k * ry * ct2  # in-control of next
    X = jnp.stack([ax, bx, cx], axis=-1)                 # [B,F,n,3]
    Y = jnp.stack([ay, by, cy], axis=-1)
    a = angle[..., 0]
    ca, sa = jnp.cos(a)[..., None, None], jnp.sin(a)[..., None, None]
    Xr = X * ca - Y * sa + center[..., 0][..., None, None]
    Yr = X * sa + Y * ca + center[..., 1][..., None, None]
    pts = jnp.stack([Xr, Yr], axis=-1)                   # [B,F,n,3,2]
    return pts.reshape(pts.shape[0], pts.shape[1], n * 6)


# --------------------------------- forward ------------------------------------
def my_generator_ovaled_multi_forward(params, noise, audio_embedding, emotions, key):
    B = audio_embedding.shape[0]
    rows = B * MAX_FIGS

    # torch draws torch.rand per (batch, figure); equivalent i.i.d. uniforms drawn
    # here (different stream than a seeded torch run).
    k_my, k_def = jax.random.split(key)
    my_noise = jax.random.uniform(k_my, (rows, Z_DIM), jnp.float32)        # figure-major
    deform_raw = jax.random.uniform(k_def, (B, MAX_FIGS, ONE_PATH_POINTS), jnp.float32)

    xna = jnp.concatenate([audio_embedding, emotions], axis=-1).astype(jnp.float32)

    fig_slab, batch_slab = fused_generator(xna, noise.astype(jnp.float32),
                                           my_noise, params)

    # unpack the lane-dense slabs
    predicted_palette = batch_slab[:, :N_PALETTE * 3].reshape(B, N_PALETTE, 3)
    figures_count = batch_slab[:, N_PALETTE * 3].astype(jnp.int32) + 1 + BASE_FIGS  # {3,4,5}
    # figure-major rows -> [B, MAX_FIGS, OUT_DIM]
    shape_params = fig_slab[:, :OUT_DIM].reshape(MAX_FIGS, B, OUT_DIM).transpose(1, 0, 2)

    center = shape_params[..., 0:2] * CANVAS_SIZE
    radius = shape_params[..., 2:4] * CANVAS_SIZE * 0.4
    angle = shape_params[..., 4:5] * 2.0 * math.pi
    fill_val = shape_params[..., 5:6]

    circle_points = create_oval(center, radius, angle, PATH_DEPTH)      # [B,F,192]
    deform = (deform_raw - 0.5) * 2.0 * jnp.mean(radius, axis=-1, keepdims=True) * 0.1
    deformated_path = circle_points + deform
    closed = jnp.concatenate([deformated_path, deformated_path[..., :2]], axis=-1)
    points = closed.reshape(B, MAX_FIGS, SEGMENTS * 3 + 1, 2)

    # colors: palette index 0 -> background, figure f -> (1 + f) % N_PALETTE,
    # concatenated with the predicted alpha component (fill_color=1)
    background_color = predicted_palette[:, 0]                          # [B,3]
    pal_idx = (1 + jnp.arange(MAX_FIGS)) % N_PALETTE
    fig_rgb = predicted_palette[:, pal_idx]                             # [B,F,3]
    fill_color = jnp.concatenate([fig_rgb, fill_val], axis=-1)          # [B,F,4]
    stroke_width = jnp.zeros((B, MAX_FIGS), jnp.float32)                # NEED_STROKE=False
    valid_mask = jnp.arange(MAX_FIGS)[None, :] < figures_count[:, None]

    # TODO(synk): as_diffvg_render / as_protosvg rasterization (diffvg) has no
    # Pallas equivalent; returning the SVG path parameters (the
    # return_diffvg_svg_params / return_figure_params output mode) instead of
    # the rendered [B, 3, canvas, canvas] image.
    return {
        "figures_count": figures_count,
        "valid_mask": valid_mask,
        "points": points,
        "fill_color": fill_color,
        "stroke_color": fill_color,          # stroke_color = fill_color when no stroke
        "stroke_width": stroke_width,
        "background_color": background_color,
        "center": center,
        "radius": radius,
        "angle": angle,
    }


# ----------------------------------- main --------------------------------------
if __name__ == "__main__":
    key = jax.random.PRNGKey(0)
    k_par, k_n, k_a, k_e, k_fwd = jax.random.split(key, 5)
    params = init_params(k_par)

    B = 2
    noise = jax.random.normal(k_n, (B, Z_DIM), jnp.float32)
    audio_embedding = jax.random.normal(k_a, (B, AUDIO_DIM), jnp.float32)
    emotions = jax.nn.one_hot(
        jax.random.randint(k_e, (B,), 0, NUM_EMOTIONS), NUM_EMOTIONS, dtype=jnp.float32)

    out = my_generator_ovaled_multi_forward(params, noise, audio_embedding,
                                            emotions, k_fwd)
    jax.tree_util.tree_map(jax.block_until_ready, out)

    assert out["points"].shape == (B, MAX_FIGS, SEGMENTS * 3 + 1, 2)
    assert out["fill_color"].shape == (B, MAX_FIGS, 4)
    assert out["background_color"].shape == (B, 3)
    assert out["figures_count"].shape == (B,)
    assert bool(jnp.all((out["figures_count"] >= 3) & (out["figures_count"] <= 5)))
    print("KERNEL_OK")
</pallas_src>

<mosaic_0001>
module attributes {stable_mosaic.version = 11 : i64} {
  func.func @_fused_kernel(%arg0: memref<2x22xf32, #tpu.memory_space<vmem>>, %arg1: memref<2x32xf32, #tpu.memory_space<vmem>>, %arg2: memref<10x32xf32, #tpu.memory_space<vmem>>, %arg3: memref<240x32xf32, #tpu.memory_space<vmem>>, %arg4: memref<22x2048xbf16, #tpu.memory_space<vmem>>, %arg5: memref<1x2048xf32, #tpu.memory_space<vmem>>, %arg6: memref<22x2048xbf16, #tpu.memory_space<vmem>>, %arg7: memref<10x128xf32, #tpu.memory_space<vmem>>, %arg8: memref<2x128xf32, #tpu.memory_space<vmem>>) attributes {dimension_semantics = [], scalar_prefetch = 0 : i64, scratch_operands = 0 : i64, tpu.core_type = #tpu.core_type<tc>} {
    %c0 = arith.constant 0 : index
    %c0_0 = arith.constant 0 : index
    %0 = vector.load %arg0[%c0, %c0_0] : memref<2x22xf32, #tpu.memory_space<vmem>>, vector<2x22xf32>
    %c0_1 = arith.constant 0 : index
    %c0_2 = arith.constant 0 : index
    %1 = vector.load %arg1[%c0_1, %c0_2] : memref<2x32xf32, #tpu.memory_space<vmem>>, vector<2x32xf32>
    %c0_3 = arith.constant 0 : index
    %c0_4 = arith.constant 0 : index
    %2 = vector.load %arg3[%c0_3, %c0_4] : memref<240x32xf32, #tpu.memory_space<vmem>>, vector<32x12xf32>
    %cst = arith.constant dense<0.000000e+00> : vector<2x12xf32>
    %3 = tpu.matmul %1, %2, %cst {dimension_numbers = #tpu.dot_dimension_numbers<[1], [0], [0], [1], [0, 0, 1, 1], [], []>} : vector<2x32xf32>, vector<32x12xf32>, vector<2x12xf32> -> vector<2x12xf32>
    %c32 = arith.constant 32 : index
    %c0_5 = arith.constant 0 : index
    %4 = vector.load %arg3[%c32, %c0_5] : memref<240x32xf32, #tpu.memory_space<vmem>>, vector<22x12xf32>
    %cst_6 = arith.constant dense<0.000000e+00> : vector<2x12xf32>
    %5 = tpu.matmul %0, %4, %cst_6 {dimension_numbers = #tpu.dot_dimension_numbers<[1], [0], [0], [1], [0, 0, 1, 1], [], []>} : vector<2x22xf32>, vector<22x12xf32>, vector<2x12xf32> -> vector<2x12xf32>
    %6 = arith.addf %3, %5 : vector<2x12xf32>
    %c56 = arith.constant 56 : index
    %c0_7 = arith.constant 0 : index
    %7 = vector.load %arg3[%c56, %c0_7] : memref<240x32xf32, #tpu.memory_space<vmem>>, vector<1x12xf32>
    %8 = vector.broadcast %7 : vector<1x12xf32> to vector<2x12xf32>
    %9 = arith.addf %6, %8 : vector<2x12xf32>
    %10 = arith.negf %9 : vector<2x12xf32>
    %11 = math.exp %10 : vector<2x12xf32>
    %cst_8 = arith.constant 1.000000e+00 : f32
    %12 = vector.broadcast %cst_8 : f32 to vector<2x12xf32>
    %13 = arith.addf %12, %11 : vector<2x12xf32>
    %14 = arith.divf %12, %13 : vector<2x12xf32>
    %c64 = arith.constant 64 : index
    %c0_9 = arith.constant 0 : index
    %15 = vector.load %arg3[%c64, %c0_9] : memref<240x32xf32, #tpu.memory_space<vmem>>, vector<22x22xf32>
    %cst_10 = arith.constant dense<0.000000e+00> : vector<2x22xf32>
    %16 = tpu.matmul %0, %15, %cst_10 {dimension_numbers = #tpu.dot_dimension_numbers<[1], [0], [0], [1], [0, 0, 1, 1], [], []>} : vector<2x22xf32>, vector<22x22xf32>, vector<2x22xf32> -> vector<2x22xf32>
    %c88 = arith.constant 88 : index
    %c0_11 = arith.constant 0 : index
    %17 = vector.load %arg3[%c88, %c0_11] : memref<240x32xf32, #tpu.memory_space<vmem>>, vector<1x22xf32>
    %18 = vector.broadcast %17 : vector<1x22xf32> to vector<2x22xf32>
    %19 = arith.addf %16, %18 : vector<2x22xf32>
    %20 = arith.addf %0, %19 : vector<2x22xf32>
    %c96 = arith.constant 96 : index
    %c0_12 = arith.constant 0 : index
    %21 = vector.load %arg3[%c96, %c0_12] : memref<240x32xf32, #tpu.memory_space<vmem>>, vector<1x22xf32>
    %c104 = arith.constant 104 : index
    %c0_13 = arith.constant 0 : index
    %22 = vector.load %arg3[%c104, %c0_13] : memref<240x32xf32, #tpu.memory_space<vmem>>, vector<1x22xf32>
    %cst_14 = arith.constant dense<0.000000e+00> : vector<2xf32>
    %23 = vector.multi_reduction <add>, %20, %cst_14 [1] : vector<2x22xf32> to vector<2xf32>
    %24 = vector.shape_cast %23 : vector<2xf32> to vector<2x1xf32>
    %cst_15 = arith.constant 2.200000e+01 : f32
    %25 = vector.broadcast %cst_15 : f32 to vector<2x1xf32>
    %26 = arith.divf %24, %25 : vector<2x1xf32>
    %27 = vector.broadcast %26 : vector<2x1xf32> to vector<2x22xf32>
    %28 = arith.subf %20, %27 : vector<2x22xf32>
    %29 = arith.mulf %28, %28 : vector<2x22xf32>
    %cst_16 = arith.constant dense<0.000000e+00> : vector<2xf32>
    %30 = vector.multi_reduction <add>, %29, %cst_16 [1] : vector<2x22xf32> to vector<2xf32>
    %31 = vector.shape_cast %30 : vector<2xf32> to vector<2x1xf32>
    %cst_17 = arith.constant 2.200000e+01 : f32
    %32 = vector.broadcast %cst_17 : f32 to vector<2x1xf32>
    %33 = arith.divf %31, %32 : vector<2x1xf32>
    %34 = vector.broadcast %26 : vector<2x1xf32> to vector<2x22xf32>
    %35 = arith.subf %20, %34 : vector<2x22xf32>
    %cst_18 = arith.constant 9.99999974E-6 : f32
    %36 = vector.broadcast %cst_18 : f32 to vector<2x1xf32>
    %37 = arith.addf %33, %36 : vector<2x1xf32>
    %38 = math.rsqrt %37 : vector<2x1xf32>
    %39 = vector.broadcast %38 : vector<2x1xf32> to vector<2x22xf32>
    %40 = arith.mulf %35, %39 : vector<2x22xf32>
    %41 = vector.broadcast %21 : vector<1x22xf32> to vector<2x22xf32>
    %42 = arith.mulf %40, %41 : vector<2x22xf32>
    %43 = vector.broadcast %22 : vector<1x22xf32> to vector<2x22xf32>
    %44 = arith.addf %42, %43 : vector<2x22xf32>
    %45 = arith.truncf %44 : vector<2x22xf32> to vector<2x22xbf16>
    %c0_19 = arith.constant 0 : index
    %c0_20 = arith.constant 0 : index
    %46 = vector.load %arg4[%c0_19, %c0_20] : memref<22x2048xbf16, #tpu.memory_space<vmem>>, vector<22x2048xbf16>
    %cst_21 = arith.constant dense<0.000000e+00> : vector<2x2048xf32>
    %47 = tpu.matmul %45, %46, %cst_21 {dimension_numbers = #tpu.dot_dimension_numbers<[1], [0], [0], [1], [0, 0, 1, 1], [], []>} : vector<2x22xbf16>, vector<22x2048xbf16>, vector<2x2048xf32> -> vector<2x2048xf32>
    %c0_22 = arith.constant 0 : index
    %c0_23 = arith.constant 0 : index
    %48 = vector.load %arg5[%c0_22, %c0_23] : memref<1x2048xf32, #tpu.memory_space<vmem>>, vector<1x2048xf32>
    %49 = vector.broadcast %48 : vector<1x2048xf32> to vector<2x2048xf32>
    %50 = arith.addf %47, %49 : vector<2x2048xf32>
    %cst_24 = arith.constant 0.000000e+00 : f32
    %51 = vector.broadcast %cst_24 : f32 to vector<2x2048xf32>
    %52 = arith.maximumf %50, %51 : vector<2x2048xf32>
    %53 = arith.truncf %52 : vector<2x2048xf32> to vector<2x2048xbf16>
    %c0_25 = arith.constant 0 : index
    %c0_26 = arith.constant 0 : index
    %54 = vector.load %arg6[%c0_25, %c0_26] : memref<22x2048xbf16, #tpu.memory_space<vmem>>, vector<22x2048xbf16>
    %cst_27 = arith.constant dense<0.000000e+00> : vector<2x22xf32>
    %55 = tpu.matmul %53, %54, %cst_27 {dimension_numbers = #tpu.dot_dimension_numbers<[1], [1], [0], [0], [0, 0, 1, 0], [], []>} : vector<2x2048xbf16>, vector<22x2048xbf16>, vector<2x22xf32> -> vector<2x22xf32>
    %c112 = arith.constant 112 : index
    %c0_28 = arith.constant 0 : index
    %56 = vector.load %arg3[%c112, %c0_28] : memref<240x32xf32, #tpu.memory_space<vmem>>, vector<1x22xf32>
    %57 = vector.broadcast %56 : vector<1x22xf32> to vector<2x22xf32>
    %58 = arith.addf %55, %57 : vector<2x22xf32>
    %59 = arith.addf %44, %58 : vector<2x22xf32>
    %c120 = arith.constant 120 : index
    %c0_29 = arith.constant 0 : index
    %60 = vector.load %arg3[%c120, %c0_29] : memref<240x32xf32, #tpu.memory_space<vmem>>, vector<1x22xf32>
    %c128 = arith.constant 128 : index
    %c0_30 = arith.constant 0 : index
    %61 = vector.load %arg3[%c128, %c0_30] : memref<240x32xf32, #tpu.memory_space<vmem>>, vector<1x22xf32>
    %cst_31 = arith.constant dense<0.000000e+00> : vector<2xf32>
    %62 = vector.multi_reduction <add>, %59, %cst_31 [1] : vector<2x22xf32> to vector<2xf32>
    %63 = vector.shape_cast %62 : vector<2xf32> to vector<2x1xf32>
    %cst_32 = arith.constant 2.200000e+01 : f32
    %64 = vector.broadcast %cst_32 : f32 to vector<2x1xf32>
    %65 = arith.divf %63, %64 : vector<2x1xf32>
    %66 = vector.broadcast %65 : vector<2x1xf32> to vector<2x22xf32>
    %67 = arith.subf %59, %66 : vector<2x22xf32>
    %68 = arith.mulf %67, %67 : vector<2x22xf32>
    %cst_33 = arith.constant dense<0.000000e+00> : vector<2xf32>
    %69 = vector.multi_reduction <add>, %68, %cst_33 [1] : vector<2x22xf32> to vector<2xf32>
    %70 = vector.shape_cast %69 : vector<2xf32> to vector<2x1xf32>
    %cst_34 = arith.constant 2.200000e+01 : f32
    %71 = vector.broadcast %cst_34 : f32 to vector<2x1xf32>
    %72 = arith.divf %70, %71 : vector<2x1xf32>
    %73 = vector.broadcast %65 : vector<2x1xf32> to vector<2x22xf32>
    %74 = arith.subf %59, %73 : vector<2x22xf32>
    %cst_35 = arith.constant 9.99999974E-6 : f32
    %75 = vector.broadcast %cst_35 : f32 to vector<2x1xf32>
    %76 = arith.addf %72, %75 : vector<2x1xf32>
    %77 = math.rsqrt %76 : vector<2x1xf32>
    %78 = vector.broadcast %77 : vector<2x1xf32> to vector<2x22xf32>
    %79 = arith.mulf %74, %78 : vector<2x22xf32>
    %80 = vector.broadcast %60 : vector<1x22xf32> to vector<2x22xf32>
    %81 = arith.mulf %79, %80 : vector<2x22xf32>
    %82 = vector.broadcast %61 : vector<1x22xf32> to vector<2x22xf32>
    %83 = arith.addf %81, %82 : vector<2x22xf32>
    %c136 = arith.constant 136 : index
    %c0_36 = arith.constant 0 : index
    %84 = vector.load %arg3[%c136, %c0_36] : memref<240x32xf32, #tpu.memory_space<vmem>>, vector<22x3xf32>
    %cst_37 = arith.constant dense<0.000000e+00> : vector<2x3xf32>
    %85 = tpu.matmul %83, %84, %cst_37 {dimension_numbers = #tpu.dot_dimension_numbers<[1], [0], [0], [1], [0, 0, 1, 1], [], []>} : vector<2x22xf32>, vector<22x3xf32>, vector<2x3xf32> -> vector<2x3xf32>
    %c160 = arith.constant 160 : index
    %c0_38 = arith.constant 0 : index
    %86 = vector.load %arg3[%c160, %c0_38] : memref<240x32xf32, #tpu.memory_space<vmem>>, vector<1x3xf32>
    %87 = vector.broadcast %86 : vector<1x3xf32> to vector<2x3xf32>
    %88 = arith.addf %85, %87 : vector<2x3xf32>
    %89 = vector.extract_strided_slice %88 {offsets = [0, 0], sizes = [2, 1], strides = [1, 1]} : vector<2x3xf32> to vector<2x1xf32>
    %90 = vector.extract_strided_slice %88 {offsets = [0, 1], sizes = [2, 1], strides = [1, 1]} : vector<2x3xf32> to vector<2x1xf32>
    %91 = vector.extract_strided_slice %88 {offsets = [0, 2], sizes = [2, 1], strides = [1, 1]} : vector<2x3xf32> to vector<2x1xf32>
    %92 = arith.cmpf ogt, %90, %89 : vector<2x1xf32>
    %cst_39 = arith.constant 1.000000e+00 : f32
    %cst_40 = arith.constant 0.000000e+00 : f32
    %93 = vector.broadcast %cst_39 : f32 to vector<2x1xf32>
    %94 = vector.broadcast %cst_40 : f32 to vector<2x1xf32>
    %95 = arith.select %92, %93, %94 : vector<2x1xi1>, vector<2x1xf32>
    %96 = arith.maximumf %89, %90 : vector<2x1xf32>
    %97 = arith.cmpf ogt, %91, %96 : vector<2x1xf32>
    %cst_41 = arith.constant 2.000000e+00 : f32
    %98 = vector.broadcast %cst_41 : f32 to vector<2x1xf32>
    %99 = arith.select %97, %98, %95 : vector<2x1xi1>, vector<2x1xf32>
    %c200 = arith.constant 200 : index
    %c0_42 = arith.constant 0 : index
    %100 = vector.load %arg3[%c200, %c0_42] : memref<240x32xf32, #tpu.memory_space<vmem>>, vector<22x18xf32>
    %cst_43 = arith.constant dense<0.000000e+00> : vector<2x18xf32>
    %101 = tpu.matmul %83, %100, %cst_43 {dimension_numbers = #tpu.dot_dimension_numbers<[1], [0], [0], [1], [0, 0, 1, 1], [], []>} : vector<2x22xf32>, vector<22x18xf32>, vector<2x18xf32> -> vector<2x18xf32>
    %c232 = arith.constant 232 : index
    %c0_44 = arith.constant 0 : index
    %102 = vector.load %arg3[%c232, %c0_44] : memref<240x32xf32, #tpu.memory_space<vmem>>, vector<1x18xf32>
    %103 = vector.broadcast %102 : vector<1x18xf32> to vector<2x18xf32>
    %104 = arith.addf %101, %103 : vector<2x18xf32>
    %105 = tpu.concatenate %104, %104, %104, %104, %104 in 0 : vector<2x18xf32>, vector<2x18xf32>, vector<2x18xf32>, vector<2x18xf32>, vector<2x18xf32> -> vector<10x18xf32>
    %c224 = arith.constant 224 : index
    %c0_45 = arith.constant 0 : index
    %106 = vector.load %arg3[%c224, %c0_45] : memref<240x32xf32, #tpu.memory_space<vmem>>, vector<5x18xf32>
    %107 = vector.extract_strided_slice %106 {offsets = [0, 0], sizes = [1, 18], strides = [1, 1]} : vector<5x18xf32> to vector<1x18xf32>
    %108 = vector.shape_cast %107 : vector<1x18xf32> to vector<1x18xf32>
    %109 = vector.broadcast %108 : vector<1x18xf32> to vector<2x18xf32>
    %110 = vector.extract_strided_slice %106 {offsets = [1, 0], sizes = [1, 18], strides = [1, 1]} : vector<5x18xf32> to vector<1x18xf32>
    %111 = vector.shape_cast %110 : vector<1x18xf32> to vector<1x18xf32>
    %112 = vector.broadcast %111 : vector<1x18xf32> to vector<2x18xf32>
    %113 = vector.extract_strided_slice %106 {offsets = [2, 0], sizes = [1, 18], strides = [1, 1]} : vector<5x18xf32> to vector<1x18xf32>
    %114 = vector.shape_cast %113 : vector<1x18xf32> to vector<1x18xf32>
    %115 = vector.broadcast %114 : vector<1x18xf32> to vector<2x18xf32>
    %116 = vector.extract_strided_slice %106 {offsets = [3, 0], sizes = [1, 18], strides = [1, 1]} : vector<5x18xf32> to vector<1x18xf32>
    %117 = vector.shape_cast %116 : vector<1x18xf32> to vector<1x18xf32>
    %118 = vector.broadcast %117 : vector<1x18xf32> to vector<2x18xf32>
    %119 = vector.extract_strided_slice %106 {offsets = [4, 0], sizes = [1, 18], strides = [1, 1]} : vector<5x18xf32> to vector<1x18xf32>
    %120 = vector.shape_cast %119 : vector<1x18xf32> to vector<1x18xf32>
    %121 = vector.broadcast %120 : vector<1x18xf32> to vector<2x18xf32>
    %122 = tpu.concatenate %109, %112, %115, %118, %121 in 0 : vector<2x18xf32>, vector<2x18xf32>, vector<2x18xf32>, vector<2x18xf32>, vector<2x18xf32> -> vector<10x18xf32>
    %c0_46 = arith.constant 0 : index
    %c0_47 = arith.constant 0 : index
    %123 = vector.load %arg2[%c0_46, %c0_47] : memref<10x32xf32, #tpu.memory_space<vmem>>, vector<10x32xf32>
    %c168 = arith.constant 168 : index
    %c0_48 = arith.constant 0 : index
    %124 = vector.load %arg3[%c168, %c0_48] : memref<240x32xf32, #tpu.memory_space<vmem>>, vector<32x18xf32>
    %cst_49 = arith.constant dense<0.000000e+00> : vector<10x18xf32>
    %125 = tpu.matmul %123, %124, %cst_49 {dimension_numbers = #tpu.dot_dimension_numbers<[1], [0], [0], [1], [0, 0, 1, 1], [], []>} : vector<10x32xf32>, vector<32x18xf32>, vector<10x18xf32> -> vector<10x18xf32>
    %126 = arith.addf %125, %105 : vector<10x18xf32>
    %127 = arith.addf %126, %122 : vector<10x18xf32>
    %128 = arith.negf %127 : vector<10x18xf32>
    %129 = math.exp %128 : vector<10x18xf32>
    %cst_50 = arith.constant 1.000000e+00 : f32
    %130 = vector.broadcast %cst_50 : f32 to vector<10x18xf32>
    %131 = arith.addf %130, %129 : vector<10x18xf32>
    %132 = arith.divf %130, %131 : vector<10x18xf32>
    %cst_51 = arith.constant 0.000000e+00 : f32
    %133 = vector.broadcast %cst_51 : f32 to vector<10x110xf32>
    %134 = tpu.concatenate %132, %133 in 1 : vector<10x18xf32>, vector<10x110xf32> -> vector<10x128xf32>
    %c0_52 = arith.constant 0 : index
    %c0_53 = arith.constant 0 : index
    %135 = vector.load %arg7[%c0_52, %c0_53] : memref<10x128xf32, #tpu.memory_space<vmem>>, vector<10x128xf32>
    tpu.vector_store %arg7[%c0_52, %c0_53], %134 {strides = array<i32>} : memref<10x128xf32, #tpu.memory_space<vmem>>, vector<10x128xf32>,
    %cst_54 = arith.constant 0.000000e+00 : f32
    %136 = vector.broadcast %cst_54 : f32 to vector<2x115xf32>
    %137 = tpu.concatenate %14, %99, %136 in 1 : vector<2x12xf32>, vector<2x1xf32>, vector<2x115xf32> -> vector<2x128xf32>
    %c0_55 = arith.constant 0 : index
    %c0_56 = arith.constant 0 : index
    %138 = vector.load %arg8[%c0_55, %c0_56] : memref<2x128xf32, #tpu.memory_space<vmem>>, vector<2x128xf32>
    tpu.vector_store %arg8[%c0_55, %c0_56], %137 {strides = array<i32>} : memref<2x128xf32, #tpu.memory_space<vmem>>, vector<2x128xf32>,
    return
  }
}

</mosaic_0001>

<bundles_post_ra>
// kernel: tpu_custom_call.1
= control target key start
LH: loop header
LB: loop body
LE: loop exit
PB: predicated region body
PF: predicated region fallthrough
CT: control target
= control target key end

     0   :  { %14 = vsyncpa [#allocation3], 0  ;;  %s2641_s0 = inlined_call_operand.vmem [shape: f32[2,22], index: 0, kind: input, shape index: {}]   ;;  %s2642_s1 = inlined_call_operand.vmem [shape: f32[2,32], index: 1, kind: input, shape index: {}]   ;;  %s2643_s2 = inlined_call_operand.vmem [shape: f32[10,32], index: 2, kind: input, shape index: {}]   ;;  %s2644_s3 = inlined_call_operand.vmem [shape: f32[240,32], index: 3, kind: input, shape index: {}]   ;;  %s2645_s4 = inlined_call_operand.vmem [shape: bf16[22,2048], index: 4, kind: input, shape index: {}]   ;;  %s2646_s5 = inlined_call_operand.vmem [shape: f32[1,2048], index: 5, kind: input, shape index: {}]   ;;  %s2647_s6 = inlined_call_operand.hbm [shape: bf16[22,2048], index: 6, kind: input, shape index: {}]   ;;  %s2648_s7 = inlined_call_operand.hbm [shape: f32[10,128], index: 7, kind: output, shape index: {0}]   ;;  %s2649_s8 = inlined_call_operand.hbm [shape: f32[2,128], index: 8, kind: output, shape index: {1}]  }
   0x1   :  { %15 = vsyncpa [#allocation4], 0 }
   0x2   :  { %16 = vsyncpa [#allocation7], 0  ;;  %s2195_s27 = smov [#allocation2]   ;;  %s2123_s9 = scalar_lea.hbm %s2647_s6, 3072 }
   0x3   :  { %s34_s28 = sshll.u32 %s2195_s27, 4  ;;  %p2124_p0 = scmp.ne.s32.totalorder %s2647_s6, %s2123_s9  ;;  %s35_s28 = int_to_ptr.vmem [resolvable:$true] %s34_s28 }
   0x4   :  { %p2127_p1 = scmp.lt.u32.totalorder %s2123_s9, %s2647_s6 }
   0x6   :  { %p2129_p2 = pnand %p2127_p1, %p2124_p0 }
   0x8   :  { %2132 = shalt.err (!%p2129_p2)
}
   0x9   :  { %s2133_s14 = scalar_lea.vmem %s35_s28, 3072  ;;  %p2138_p4 = scmp.lt.s32.totalorder %s35_s28, %s35_s28 }
   0xa   :  { %p2134_p3 = scmp.ne.s32.totalorder %s35_s28, %s2133_s14  ;;  %p2139_p5 = scmp.lt.s32.totalorder %s2133_s14, %s2133_s14 }
   0xc   :  { %p2140_p6 = por %p2139_p5, %p2138_p4 }
   0xe   :  { %p2141_p7 = pnand %p2140_p6, %p2134_p3 }
  0x10   :  { %2144 = shalt.err (!%p2141_p7)
}
  0x11   :  { %s2196_s15 = smov 1024   ;;  %s2197_s16 = smov 64  }
  0x12   :  { %40 = dma.hbm_to_vmem [thread:$0]  %s2647_s6, 3072, %s35_s28, [#allocation3], %s2196_s15, %s2196_s15, %s2197_s16  }
  0x13   :  { %2189 = dma.done.wait [#allocation3], 3072  }
  0x14   :  { %2190 = vsyncadd [#allocation3], 4294964224  ;;  %v2198_v0 = vmov 0.0|0.0   ;;  %vm2199_vm0 = vmmov 0   ;;  %v2200_v1 = vmov 0.0   ;;  %v51_v2 = vld [vmem:[%s2644_s3 + $0x20] sm:$0xff] }
  0x15   :  { %2034 = vmatprep.subr.bf16.mxu0 %v2198_v0  ;;  %2037 = vmatprep.subr.bf16.mxu1 %v2198_v0  ;;  %v52_v3 = vld [vmem:[%s2644_s3 + $0x28] sm:$0xff]  ;;  %v47_v4 = vld [vmem:[%s2644_s3] sm:$0xff]  ;;  %v49_v7 = vld [vmem:[%s2644_s3 + $0x10] sm:$0xff]  ;;  %vm58_vm1 = vcmask 1045504   ;;  %vm54_vm2 = vcmask 179200   ;;  %vm132_vm3 = vcmask 261120  }
  0x16   :  { %1982 = vmatprep.mubr.msk.f32.mxu0 %vm2199_vm0, %v2200_v1  ;;  %1993 = vmatprep.mubr.msk.f32.mxu1 %vm2199_vm0, %v2200_v1  ;;  %v2035_v5 = vpack.c.bf16 %v52_v3, %v51_v2  ;;  %v48_v6 = vld [vmem:[%s2644_s3 + $0x8] sm:$0xff]  ;;  %v50_v9 = vld [vmem:[%s2644_s3 + $0x18] sm:$0xff]  ;;  %v218_v10 = vld [vmem:[%s2644_s3 + $0x40] sm:$0xff]  ;;  %vm302_vm4 = vcmask 173056   ;;  %vm559_vm5 = vcmask 1042432   ;;  %v2201_v55 = vmov 0  }
  0x17   :  { %v2038_v8 = vpack.c.bf16 %v48_v6, %v47_v4  ;;  %v219_v11 = vld [vmem:[%s2644_s3 + $0x48] sm:$0xff]  ;;  %v53_v12 = vld [vmem:[%s2644_s3 + $0x30] sm:$0x3f]  ;;  %v2041_v13 = vpack.c.bf16 %v50_v9, %v49_v7  ;;  %v45_v14 = vld [vmem:[%s2641_s0] sm:$0x3]  ;;  %vm1671_vm6 = vcmask 1041408  }
  0x18   :  { %2036 = vmatpush3.bf16.msra.mxu0 %v2035_v5  ;;  %v2044_v15 = vpack.c.bf16 %v219_v11, %v218_v10  ;;  %v46_v16 = vld [vmem:[%s2642_s1] sm:$0x3]  ;;  %v220_v17 = vld [vmem:[%s2644_s3 + $0x50] sm:$0x3f]  ;;  %v1851_v23 = vld [vmem:[%s2644_s3 + $0x58] ss:$0 sm:$0xff] }
  0x19   :  { %2039 = vmatpush3.bf16.msra.mxu1 %v2038_v8  ;;  %1980 = vmatprep.subr.mxu0 %v2200_v1  ;;  %v328_v34 = vld [vmem:[%s2645_s4] sm:$0xff]  ;;  %v329_v36 = vld [vmem:[%s2645_s4 + $0x8] sm:$0xff]  ;;  %v330_v50 = vld [vmem:[%s2645_s4 + $0x10] sm:$0xff]  ;;  %s2203_s10 = smov 127   ;;  %vm1673_vm7 = vcmask 1043456   ;;  %vm1801_vm8 = vcmask 146432  }
  0x1a   :  { %2040 = vmatprep.subr.bf16.mxu1 %v2198_v0  ;;  %v336_v35 = vld [vmem:[%s2645_s4 + $0x40] sm:$0xff]  ;;  %v337_v38 = vld [vmem:[%s2645_s4 + $0x48] sm:$0xff]  ;;  %v338_v51 = vld [vmem:[%s2645_s4 + $0x50] sm:$0xff]  ;;  %s2204_s11 = smov 2   ;;  %s2205_s12 = smov [#allocation5]  }
  0x1b   :  { %v1857_v37 = vcombine.high %v328_v34, %v336_v35  ;;  %v1856_v39 = vcombine.low %v328_v34, %v336_v35  ;;  %v1858_v40 = vcombine.low %v329_v36, %v337_v38  ;;  %v1859_v41 = vcombine.high %v329_v36, %v337_v38  ;;  %v344_v42 = vld [vmem:[%s2645_s4 + $0x80] sm:$0x77]  ;;  %v345_v43 = vld [vmem:[%s2645_s4 + $0x88] sm:$0x77]  ;;  %v331_v52 = vld [vmem:[%s2645_s4 + $0x18] sm:$0xff]  ;;  %s1820_s13 = sshll.u32 %s2205_s12, 4  ;;  %s1821_s13 = int_to_ptr.vmem [resolvable:$true] %s1820_s13 }
  0x1c   :  { %1981 = vmatpush3.msk.msra.mxu0 %vm58_vm1, %v53_v12  ;;  %v1873_v44 = vcombine.high %v344_v42, %v344_v42  ;;  %v1875_v45 = vcombine.high %v345_v43, %v345_v43  ;;  %v1872_v46 = vcombine.low %v344_v42, %v344_v42  ;;  %v1874_v47 = vcombine.low %v345_v43, %v345_v43  ;;  %v339_v54 = vld [vmem:[%s2645_s4 + $0x58] sm:$0xff]  ;;  %v1854_v63 = vld [vmem:[%s2644_s3 + $0x60] ss:$0 sm:$0xff]  ;;  %v1855_v3 = vld [vmem:[%s2644_s3 + $0x68] ss:$0 sm:$0xff]  ;;  %s2145_s14 = scalar_lea.vmem %s1821_s13, 256  ;;  %p2150_p9 = scmp.lt.s32.totalorder %s1821_s13, %s1821_s13 }
  0x1d   :  { %2042 = vmatpush3.bf16.msra.mxu1 %v2041_v13  ;;  %1983 = vmatmul.mubr.msk.f32.vlgmr.msra.gmra.mrb[0].mxu0 %vm54_vm2, %v45_v14  ;;  %v1861_v53 = vcombine.high %v330_v50, %v338_v51  ;;  %v1860_v56 = vcombine.low %v330_v50, %v338_v51  ;;  %v1862_v57 = vcombine.low %v331_v52, %v339_v54  ;;  %v346_v5 = vld [vmem:[%s2645_s4 + $0x90] sm:$0x77]  ;;  %v347_v6 = vld [vmem:[%s2645_s4 + $0x98] sm:$0x77]  ;;  %v332_v13 = vld [vmem:[%s2645_s4 + $0x20] sm:$0xff]  ;;  %p2146_p8 = scmp.ne.s32.totalorder %s1821_s13, %s2145_s14  ;;  %p2151_p10 = scmp.lt.s32.totalorder %s2145_s14, %s2145_s14 }
  0x1e   :  { %2043 = vmatprep.subr.bf16.mxu0 %v2198_v0  ;;  %2002 = vmatprep.mubr.msk.f32.mxu0 %vm2199_vm0, %v2200_v1  ;;  %v561_v48 = vsel %vm559_vm5, %v1872_v46, 0  ;;  %v567_v49 = vsel %vm559_vm5, %v1874_v47, 0  ;;  %v1863_v58 = vcombine.high %v331_v52, %v339_v54  ;;  %v1877_v8 = vcombine.high %v346_v5, %v346_v5  ;;  %v350_v38 = vld [vmem:[%s2645_s4 + $0xb0] sm:$0x77]  ;;  %v968_v46 = vld [vmem:[#allocation2] sm:$0xff] }
  0x1f   :  { %2045 = vmatpush3.bf16.msra.mxu0 %v2044_v15  ;;  %608 = vmatprep.subr.bf16.mxu1 %v1857_v37  ;;  %v1879_v10 = vcombine.high %v347_v6, %v347_v6  ;;  %v1876_v11 = vcombine.low %v346_v5, %v346_v5  ;;  %v1878_v12 = vcombine.low %v347_v6, %v347_v6  ;;  %v333_v15 = vld [vmem:[%s2645_s4 + $0x28] sm:$0xff]  ;;  %v976_v47 = vld [vmem:[#allocation2 + $0x40] sm:$0xff]  ;;  %p2152_p11 = por %p2151_p10, %p2150_p9 }
  0x20   :  { %1994 = vmatmul.mubr.msk.f32.vlgmr.msra.gmra.mrb[0].mxu1 %vm132_vm3, %v46_v16  ;;  %2000 = vmatprep.subr.mxu0 %v2200_v1  ;;  %v341_v16 = vld [vmem:[%s2645_s4 + $0x68] sm:$0xff]  ;;  %v1885_v42 = vcombine.high %v350_v38, %v350_v38  ;;  %v1906_v52 = vcombine.high %v968_v46, %v976_v47  ;;  %v1905_v54 = vcombine.low %v968_v46, %v976_v47 }
  0x21   :  { %609 = vmatpush1.bf16.msra.mxu1 %v1856_v39  ;;  %640 = vmatprep.mubr.bf16.mxu1 %v2201_v55  ;;  %v351_v39 = vld [vmem:[%s2645_s4 + $0xb8] sm:$0x77]  ;;  %p2153_p12 = pnand %p2152_p11, %p2146_p8 }
  0x22   :  { %1888 = vmatprep.subr.msk.bf16.mxu1 %vm559_vm5, %v1873_v44  ;;  %v1887_v43 = vcombine.high %v351_v39, %v351_v39  ;;  %v1884_v44 = vcombine.low %v350_v38, %v350_v38 }
  0x23   :  { %2001 = vmatpush3.msk.msra.mxu0 %vm58_vm1, %v220_v17  ;;  %v573_v17 = vsel %vm559_vm5, %v1876_v11, 0 }
  0x24   :  { %2003 = vmatmul.mubr.msk.f32.vlgmr.msra.gmra.mrb[2].mxu0 %vm54_vm2, %v45_v14  ;;  %649 = vmatprep.subr.bf16.mxu0 %v1859_v41  ;;  %v597_v50 = vsel %vm559_vm5, %v1884_v44, 0 }
  0x25   :  { %650 = vmatpush1.bf16.msra.mxu0 %v1858_v40  ;;  %611 = vmatpush1.bf16.msra.mxu1 %v561_v48  ;;  %v969_v48 = vld [vmem:[#allocation2 + $0x8] sm:$0xff] }
  0x26   :  { %1890 = vmatprep.subr.msk.bf16.mxu0 %vm559_vm5, %v1875_v45  ;;  %681 = vmatprep.mubr.bf16.mxu0 %v2201_v55  ;;  %v1886_v45 = vcombine.low %v351_v39, %v351_v39  ;;  %v986_v39 = vld [vmem:[#allocation2 + $0x90] sm:$0x77] }
  0x27   :  { %690 = vmatprep.subr.bf16.mxu1 %v1861_v53 }
  0x28   :  { %v603_v51 = vsel %vm559_vm5, %v1886_v45, 0 }
  0x29   :  { %652 = vmatpush1.bf16.msra.mxu0 %v567_v49  ;;  %v977_v49 = vld [vmem:[#allocation2 + $0x48] sm:$0xff] }
  0x2a   :  { %731 = vmatprep.subr.bf16.mxu0 %v1863_v58  ;;  %v1908_v53 = vcombine.high %v969_v48, %v977_v49  ;;  %v985_v58 = vld [vmem:[#allocation2 + $0x88] sm:$0x77] }
  0xf0   :  { %v128_v18 = vpop.f32.mrb[0].mxu0 }
  0xf1   :  { %v1984_v19 = vpop.f32.mrb[1].mxu0 }
  0xf3   :  { %v202_v20 = vpop.f32.mrb[0].mxu1 }
  0xf4   :  { %v2320_v21 = vadd.f32 %v202_v20, %v128_v18  ;;  %v1995_v22 = vpop.f32.mrb[1].mxu1  ;;  %v579_v18 = vsel %vm559_vm5, %v1878_v12, 0  ;;  %v1867_v20 = vcombine.high %v333_v15, %v341_v16 }
  0xf5   :  { %v348_v22 = vld [vmem:[%s2645_s4 + $0xa0] sm:$0x77] }
  0xf7   :  { %v295_v24 = vpop.f32.mrb[2].mxu0 }
  0xf8   :  { %v296_v25 = vadd.f32 %v1851_v23, %v295_v24  ;;  %v2004_v26 = vpop.f32.mrb[3].mxu0  ;;  %v349_v23 = vld [vmem:[%s2645_s4 + $0xa8] sm:$0x77] }
  0xf9   :  { %v1881_v26 = vcombine.high %v348_v22, %v348_v22 }
  0xfa   :  { %v299_v27 = vadd.f32 %v296_v25, %v45_v14  ;;  %v340_v14 = vld [vmem:[%s2645_s4 + $0x60] sm:$0xff]  ;;  %v1866_v25 = vcombine.low %v333_v15, %v341_v16 }
  0xfb   :  { %v1865_v19 = vcombine.high %v332_v13, %v340_v14  ;;  %v1864_v24 = vcombine.low %v332_v13, %v340_v14  ;;  %v2462_v13 = vld [vmem:[%s2646_s5] sm:$0xff] }
  0xfc   :  { %v303_v28 = vsel %vm302_vm4, %v299_v27, 0.0 }
  0xfd   :  { %304 = vadd.xlane.f32.xlu0 %v303_v28  ;;  %v1880_v28 = vcombine.low %v348_v22, %v348_v22 }
  0xff   :  { %v585_v34 = vsel %vm559_vm5, %v1880_v28, 0 }
 0x18a   :  { %v305_v29 = vpop.xlane.xlu0 %304 }
 0x18b   :  { %v307_v30 = vmul.f32 0.045454547, %v305_v29  ;;  %v1882_v29 = vcombine.low %v349_v23, %v349_v23 }
 0x18d   :  { %v308_v31 = vsub.f32 %v299_v27, %v307_v30  ;;  %v1883_v27 = vcombine.high %v349_v23, %v349_v23  ;;  %v334_v30 = vld [vmem:[%s2645_s4 + $0x30] sm:$0xff]  ;;  %v591_v35 = vsel %vm559_vm5, %v1882_v29, 0 }
 0x18f   :  { %v309_v32 = vmul.f32 %v308_v31, %v308_v31 }
 0x191   :  { %v310_v33 = vsel %vm302_vm4, %v309_v32, 0.0  ;;  %v335_v32 = vld [vmem:[%s2645_s4 + $0x38] sm:$0xff] }
 0x192   :  { %311 = vadd.xlane.f32.xlu0 %v310_v33  ;;  %v343_v33 = vld [vmem:[%s2645_s4 + $0x78] sm:$0xff] }
 0x193   :  { %v1871_v37 = vcombine.high %v335_v32, %v343_v33  ;;  %v1870_v41 = vcombine.low %v335_v32, %v343_v33 }
 0x21f   :  { %v312_v59 = vpop.xlane.xlu0 %311 }
 0x220   :  { %v313_v60 = vmul.f32 0.045454547, %v312_v59 }
 0x222   :  { %v314_v61 = vadd.f32 1e-05, %v313_v60  ;;  %v1924_v60 = vcombine.high %v985_v58, %v985_v58 }
 0x224   :  { %2107 = vrsqrt.f32 %v314_v61 }
 0x22e   :  { %v2108_v62 = vpop.eup %2107 }
 0x22f   :  { %v316_v2 = vmul.f32 %v2108_v62, %v308_v31  ;;  %v342_v31 = vld [vmem:[%s2645_s4 + $0x70] sm:$0xff] }
 0x230   :  { %v1869_v36 = vcombine.high %v334_v30, %v342_v31  ;;  %v1868_v40 = vcombine.low %v334_v30, %v342_v31  ;;  %v970_v62 = vld [vmem:[#allocation2 + $0x10] sm:$0xff] }
 0x231   :  { %v321_v4 = vmul.f32 %v1854_v63, %v316_v2  ;;  %v978_v63 = vld [vmem:[#allocation2 + $0x50] sm:$0xff]  ;;  %v971_v2 = vld [vmem:[#allocation2 + $0x18] sm:$0xff] }
 0x232   :  { %v1909_v5 = vcombine.low %v970_v62, %v978_v63 }
 0x233   :  { %v2375_v7 = vadd.f32 %v1855_v3, %v321_v4  ;;  %v1910_v3 = vcombine.high %v970_v62, %v978_v63  ;;  %v979_v4 = vld [vmem:[#allocation2 + $0x58] sm:$0xff]  ;;  %v2498_v63 = vld [vmem:[%s2646_s5 + $0x8] sm:$0xff] }
 0x234   :  { %v1911_v6 = vcombine.low %v971_v2, %v979_v4 }
 0x235   :  { %v2379_v9 = vpack.c.bf16 %v2375_v7, %v2375_v7 }
 0x237   :  { %1889 = vmatmul.mubr.msk.bf16.vlgmr.msra.gmra.mrb[4].mxu1 %vm54_vm2, %v2379_v9  ;;  %1891 = vmatmul.mubr.msk.bf16.vlgmr.msra.gmra.mrb[4].mxu0 %vm54_vm2, %v2379_v9 }
 0x238   :  { %691 = vmatpush1.bf16.msra.mxu1 %v1860_v56  ;;  %732 = vmatpush1.bf16.msra.mxu0 %v1862_v57  ;;  %v1907_v56 = vcombine.low %v969_v48, %v977_v49  ;;  %v984_v57 = vld [vmem:[#allocation2 + $0x80] sm:$0x77]  ;;  %v1926_v49 = vcombine.high %v986_v39, %v986_v39 }
 0x239   :  { %1892 = vmatprep.subr.msk.bf16.mxu1 %vm559_vm5, %v1877_v8  ;;  %1894 = vmatprep.subr.msk.bf16.mxu0 %vm559_vm5, %v1879_v10  ;;  %v1922_v59 = vcombine.high %v984_v57, %v984_v57  ;;  %v1921_v61 = vcombine.low %v984_v57, %v984_v57  ;;  %v1912_v8 = vcombine.high %v971_v2, %v979_v4  ;;  %v972_v2 = vld [vmem:[#allocation2 + $0x20] sm:$0xff] }
 0x23a   :  { %722 = vmatprep.mubr.bf16.mxu1 %v2201_v55  ;;  %763 = vmatprep.mubr.bf16.mxu0 %v2201_v55 }
 0x23c   :  { %693 = vmatpush1.bf16.msra.mxu1 %v573_v17  ;;  %734 = vmatpush1.bf16.msra.mxu0 %v579_v18 }
 0x23d   :  { %772 = vmatprep.subr.bf16.mxu1 %v1865_v19  ;;  %813 = vmatprep.subr.bf16.mxu0 %v1867_v20 }
 0x23f   :  { %1893 = vmatmul.mubr.msk.bf16.vlgmr.msra.gmra.mrb[8].mxu1 %vm54_vm2, %v2379_v9  ;;  %1895 = vmatmul.mubr.msk.bf16.vlgmr.msra.gmra.mrb[8].mxu0 %vm54_vm2, %v2379_v9 }
 0x240   :  { %773 = vmatpush1.bf16.msra.mxu1 %v1864_v24  ;;  %814 = vmatpush1.bf16.msra.mxu0 %v1866_v25 }
 0x241   :  { %1896 = vmatprep.subr.msk.bf16.mxu1 %vm559_vm5, %v1881_v26  ;;  %1898 = vmatprep.subr.msk.bf16.mxu0 %vm559_vm5, %v1883_v27 }
 0x242   :  { %804 = vmatprep.mubr.bf16.mxu1 %v2201_v55  ;;  %845 = vmatprep.mubr.bf16.mxu0 %v2201_v55 }
 0x244   :  { %775 = vmatpush1.bf16.msra.mxu1 %v585_v34  ;;  %816 = vmatpush1.bf16.msra.mxu0 %v591_v35 }
 0x245   :  { %854 = vmatprep.subr.bf16.mxu1 %v1869_v36  ;;  %895 = vmatprep.subr.bf16.mxu0 %v1871_v37 }
 0x247   :  { %1897 = vmatmul.mubr.msk.bf16.vlgmr.msra.gmra.mrb[12].mxu1 %vm54_vm2, %v2379_v9  ;;  %1899 = vmatmul.mubr.msk.bf16.vlgmr.msra.gmra.mrb[12].mxu0 %vm54_vm2, %v2379_v9 }
 0x248   :  { %855 = vmatpush1.bf16.msra.mxu1 %v1868_v40  ;;  %896 = vmatpush1.bf16.msra.mxu0 %v1870_v41  ;;  %v987_v40 = vld [vmem:[#allocation2 + $0x98] sm:$0x77] }
 0x249   :  { %1900 = vmatprep.subr.msk.bf16.mxu1 %vm559_vm5, %v1885_v42  ;;  %1902 = vmatprep.subr.msk.bf16.mxu0 %vm559_vm5, %v1887_v43 }
 0x24a   :  { %886 = vmatprep.mubr.bf16.mxu1 %v2201_v55  ;;  %927 = vmatprep.mubr.bf16.mxu0 %v2201_v55  ;;  %v1923_v55 = vcombine.low %v985_v58, %v985_v58 }
 0x24c   :  { %857 = vmatpush1.bf16.msra.mxu1 %v597_v50  ;;  %898 = vmatpush1.bf16.msra.mxu0 %v603_v51  ;;  %v1928_v50 = vcombine.high %v987_v40, %v987_v40 }
 0x24d   :  { %1133 = vmatprep.subr.bf16.mxu1 %v1906_v52  ;;  %1173 = vmatprep.subr.bf16.mxu0 %v1908_v53 }
 0x24f   :  { %1901 = vmatmul.mubr.msk.bf16.vlgmr.msra.gmra.mrb[16].mxu1 %vm54_vm2, %v2379_v9  ;;  %1903 = vmatmul.mubr.msk.bf16.vlgmr.msra.gmra.mrb[16].mxu0 %vm54_vm2, %v2379_v9  ;;  %v356_v9 = vlaneseq }
 0x251   :  { %v2451_v10 = vshrl.u32 %v356_v9, 7  ;;  %v1925_v9 = vcombine.low %v986_v39, %v986_v39 }
 0x253   :  { %v2454_v11 = vsub.s32 0, %v2451_v10  ;;  %v2457_v12 = vsub.s32 2, %v2451_v10  ;;  %v2465_v14 = vsub.s32 1, %v2451_v10  ;;  %v2468_v15 = vsub.s32 3, %v2451_v10 }
 0x254   :  { %v378_v31 = vsub.s32 5, %v2451_v10  ;;  %v386_v32 = vsub.s32 7, %v2451_v10  ;;  %v2481_v41 = vsub.s32 4, %v2451_v10  ;;  %v382_v42 = vsub.s32 6, %v2451_v10 }
 0x255   :  { %1134 = vmatpush1.bf16.xpose.msra.mxu1 %v1905_v54  ;;  %1174 = vmatpush1.bf16.xpose.msra.mxu0 %v1907_v56  ;;  %v359_v16 = vrot.slane %v2462_v13, %v2454_v11  ;;  %v367_v17 = vrot.slane %v2462_v13, %v2457_v12  ;;  %v363_v18 = vrot.slane %v2462_v13, %v2465_v14 }
 0x256   :  { %1135 = vmatprep.subr.bf16.mxu1 %v1922_v59  ;;  %1175 = vmatprep.subr.bf16.mxu0 %v1924_v60  ;;  %v371_v19 = vrot.slane %v2462_v13, %v2468_v15  ;;  %v379_v45 = vrot.slane %v2462_v13, %v378_v31  ;;  %v387_v46 = vrot.slane %v2462_v13, %v386_v32 }
 0x257   :  { %v375_v60 = vrot.slane %v2462_v13, %v2481_v41 }
 0x25d   :  { %1136 = vmatpush1.bf16.xpose.msra.mxu1 %v1921_v61  ;;  %1176 = vmatpush1.bf16.xpose.msra.mxu0 %v1923_v55  ;;  %v383_v61 = vrot.slane %v2462_v13, %v382_v42  ;;  %v395_v13 = vrot.slane %v2498_v63, %v2465_v14 }
 0x25e   :  { %1213 = vmatprep.subr.bf16.mxu1 %v1910_v3  ;;  %1253 = vmatprep.subr.bf16.mxu0 %v1912_v8  ;;  %v981_v8 = vld [vmem:[#allocation2 + $0x68] sm:$0xff] }
 0x30a   :  { %v642_v20 = vpop.f32.mrb[4].mxu1  ;;  %v683_v22 = vpop.f32.mrb[4].mxu0 }
 0x30b   :  { %v643_v23 = vadd.f32 %v642_v20, %v359_v16  ;;  %v684_v24 = vadd.f32 %v683_v22, %v367_v17  ;;  %v644_v25 = vpop.f32.mrb[5].mxu1  ;;  %v685_v26 = vpop.f32.mrb[5].mxu0  ;;  %v1927_v16 = vcombine.low %v987_v40, %v987_v40 }
 0x30c   :  { %v645_v27 = vadd.f32 %v644_v25, %v363_v18  ;;  %v686_v28 = vadd.f32 %v685_v26, %v371_v19  ;;  %v646_v29 = vpop.f32.mrb[6].mxu1  ;;  %v687_v30 = vpop.f32.mrb[6].mxu0  ;;  %v403_v19 = vrot.slane %v2498_v63, %v2468_v15 }
 0x30d   :  { %v936_v33 = vmax.f32 %v643_v23, 0.0  ;;  %v938_v34 = vmax.f32 %v684_v24, 0.0  ;;  %v647_v35 = vpop.f32.mrb[7].mxu1  ;;  %v688_v36 = vpop.f32.mrb[7].mxu0 }
 0x30e   :  { %v937_v37 = vmax.f32 %v645_v27, 0.0  ;;  %v939_v38 = vmax.f32 %v686_v28, 0.0 }
 0x30f   :  { %v952_v47 = vpack.c.bf16 %v936_v33, %v936_v33  ;;  %v954_v48 = vpack.c.bf16 %v938_v34, %v938_v34 }
 0x310   :  { %v953_v43 = vpack.c.bf16 %v937_v37, %v937_v37  ;;  %v955_v44 = vpack.c.bf16 %v939_v38, %v939_v38 }
 0x312   :  { %v724_v51 = vpop.f32.mrb[8].mxu1  ;;  %v765_v52 = vpop.f32.mrb[8].mxu0  ;;  %1165 = vmatprep.mubr.bf16.mxu1 %v953_v43  ;;  %1205 = vmatprep.mubr.bf16.mxu0 %v955_v44  ;;  %v988_v43 = vld [vmem:[#allocation2 + $0xa0] sm:$0x77]  ;;  %v989_v44 = vld [vmem:[#allocation2 + $0xa8] sm:$0x77] }
 0x313   :  { %v726_v53 = vpop.f32.mrb[9].mxu1  ;;  %v767_v54 = vpop.f32.mrb[9].mxu0  ;;  %1166 = vmatmul.mubr.bf16.vlgmr.msra.gmra.mrb[20].mxu1 %v952_v47  ;;  %1206 = vmatmul.mubr.bf16.vlgmr.msra.gmra.mrb[20].mxu0 %v954_v48  ;;  %v725_v20 = vadd.f32 %v724_v51, %v375_v60  ;;  %v766_v22 = vadd.f32 %v765_v52, %v383_v61  ;;  %v391_v60 = vrot.slane %v2498_v63, %v2454_v11 }
 0x314   :  { %v727_v56 = vadd.f32 %v726_v53, %v379_v45  ;;  %v768_v57 = vadd.f32 %v767_v54, %v387_v46  ;;  %1214 = vmatpush1.bf16.xpose.msra.mxu1 %v1909_v5  ;;  %1254 = vmatpush1.bf16.xpose.msra.mxu0 %v1911_v6  ;;  %v728_v58 = vpop.f32.mrb[10].mxu1  ;;  %v769_v59 = vpop.f32.mrb[10].mxu0  ;;  %v980_v5 = vld [vmem:[#allocation2 + $0x60] sm:$0xff]  ;;  %v973_v6 = vld [vmem:[#allocation2 + $0x28] sm:$0xff]  ;;  %v1930_v53 = vcombine.high %v988_v43, %v988_v43 }
 0x315   :  { %v729_v55 = vpop.f32.mrb[11].mxu1  ;;  %v770_v62 = vpop.f32.mrb[11].mxu0  ;;  %1215 = vmatprep.subr.bf16.mxu1 %v1926_v49  ;;  %1255 = vmatprep.subr.bf16.mxu0 %v1928_v50  ;;  %v1914_v23 = vcombine.high %v972_v2, %v980_v5  ;;  %v1916_v24 = vcombine.high %v973_v6, %v981_v8  ;;  %v940_v35 = vmax.f32 %v725_v20, 0.0  ;;  %v942_v36 = vmax.f32 %v766_v22, 0.0 }
 0x316   :  { %v941_v3 = vmax.f32 %v727_v56, 0.0  ;;  %v943_v4 = vmax.f32 %v768_v57, 0.0  ;;  %v1913_v46 = vcombine.low %v972_v2, %v980_v5  ;;  %v1915_v50 = vcombine.low %v973_v6, %v981_v8  ;;  %v974_v2 = vld [vmem:[#allocation2 + $0x30] sm:$0xff]  ;;  %v975_v5 = vld [vmem:[#allocation2 + $0x38] sm:$0xff] }
 0x317   :  { %v956_v47 = vpack.c.bf16 %v940_v35, %v940_v35  ;;  %v958_v48 = vpack.c.bf16 %v942_v36, %v942_v36  ;;  %v1932_v54 = vcombine.high %v989_v44, %v989_v44  ;;  %v399_v62 = vrot.slane %v2498_v63, %v2457_v12  ;;  %v983_v6 = vld [vmem:[#allocation2 + $0x78] sm:$0xff] }
 0x318   :  { %v957_v17 = vpack.c.bf16 %v941_v3, %v941_v3  ;;  %v959_v18 = vpack.c.bf16 %v943_v4, %v943_v4  ;;  %v982_v3 = vld [vmem:[#allocation2 + $0x70] sm:$0xff]  ;;  %v411_v4 = vrot.slane %v2498_v63, %v378_v31  ;;  %v419_v8 = vrot.slane %v2498_v63, %v386_v32 }
 0x31a   :  { %v806_v25 = vpop.f32.mrb[12].mxu1  ;;  %v847_v26 = vpop.f32.mrb[12].mxu0  ;;  %1245 = vmatprep.mubr.bf16.mxu1 %v957_v17  ;;  %1285 = vmatprep.mubr.bf16.mxu0 %v959_v18  ;;  %v1931_v17 = vcombine.low %v989_v44, %v989_v44  ;;  %v1918_v18 = vcombine.high %v974_v2, %v982_v3 }
 0x31b   :  { %v808_v27 = vpop.f32.mrb[13].mxu1  ;;  %v849_v28 = vpop.f32.mrb[13].mxu0 }
 0x31c   :  { %v809_v29 = vadd.f32 %v808_v27, %v395_v13  ;;  %v850_v30 = vadd.f32 %v849_v28, %v403_v19  ;;  %1216 = vmatpush1.bf16.xpose.msra.mxu1 %v1925_v9  ;;  %1256 = vmatpush1.bf16.xpose.msra.mxu0 %v1927_v16  ;;  %v810_v33 = vpop.f32.mrb[14].mxu1  ;;  %v851_v34 = vpop.f32.mrb[14].mxu0  ;;  %v1929_v9 = vcombine.low %v988_v43, %v988_v43  ;;  %v990_v27 = vld [vmem:[#allocation2 + $0xb0] sm:$0x77] }
 0x31d   :  { %v811_v37 = vpop.f32.mrb[15].mxu1  ;;  %v852_v38 = vpop.f32.mrb[15].mxu0  ;;  %1293 = vmatprep.subr.bf16.mxu1 %v1914_v23  ;;  %1333 = vmatprep.subr.bf16.mxu0 %v1916_v24  ;;  %v807_v16 = vadd.f32 %v806_v25, %v391_v60  ;;  %v848_v13 = vadd.f32 %v847_v26, %v399_v62  ;;  %v1920_v19 = vcombine.high %v975_v5, %v983_v6 }
 0x31e   :  { %v945_v39 = vmax.f32 %v809_v29, 0.0  ;;  %v947_v40 = vmax.f32 %v850_v30, 0.0  ;;  %v1917_v29 = vcombine.low %v974_v2, %v982_v3  ;;  %v991_v30 = vld [vmem:[#allocation2 + $0xb8] sm:$0x77]  ;;  %v1919_v33 = vcombine.low %v975_v5, %v983_v6 }
 0x31f   :  { %v944_v23 = vmax.f32 %v807_v16, 0.0  ;;  %v946_v24 = vmax.f32 %v848_v13, 0.0  ;;  %v1934_v34 = vcombine.high %v990_v27, %v990_v27  ;;  %v1936_v26 = vcombine.high %v991_v30, %v991_v30 }
 0x320   :  { %v961_v45 = vpack.c.bf16 %v945_v39, %v945_v39  ;;  %v963_v49 = vpack.c.bf16 %v947_v40, %v947_v40  ;;  %v407_v37 = vrot.slane %v2498_v63, %v2481_v41  ;;  %v415_v38 = vrot.slane %v2498_v63, %v382_v42  ;;  %v1904_v42 = vld [vmem:[%s2644_s3 + $0x70] ss:$0 sm:$0xff] }
 0x321   :  { %v960_v32 = vpack.c.bf16 %v944_v23, %v944_v23  ;;  %v962_v25 = vpack.c.bf16 %v946_v24, %v946_v24  ;;  %v1933_v39 = vcombine.low %v990_v27, %v990_v27  ;;  %v1935_v43 = vcombine.low %v991_v30, %v991_v30 }
 0x322   :  { %v2504_v51 = vpop.f32.mrb[16].mxu1  ;;  %v2506_v52 = vpop.f32.mrb[16].mxu0 }
 0x323   :  { %1246 = vmatmul.mubr.bf16.vlgmr.msra.gmra.mrb[24].mxu1 %v956_v47  ;;  %1286 = vmatmul.mubr.bf16.vlgmr.msra.gmra.mrb[24].mxu0 %v958_v48  ;;  %v890_v56 = vpop.f32.mrb[17].mxu1  ;;  %v931_v57 = vpop.f32.mrb[17].mxu0  ;;  %v889_v40 = vadd.f32 %v2504_v51, %v407_v37  ;;  %v930_v44 = vadd.f32 %v2506_v52, %v415_v38 }
 0x324   :  { %1294 = vmatpush1.bf16.xpose.msra.mxu1 %v1913_v46  ;;  %1325 = vmatprep.mubr.bf16.mxu1 %v961_v45  ;;  %v892_v58 = vpop.f32.mrb[18].mxu1  ;;  %v933_v59 = vpop.f32.mrb[18].mxu0  ;;  %v891_v20 = vadd.f32 %v890_v56, %v411_v4  ;;  %v932_v22 = vadd.f32 %v931_v57, %v419_v8 }
 0x325   :  { %1334 = vmatpush1.bf16.xpose.msra.mxu0 %v1915_v50  ;;  %1365 = vmatprep.mubr.bf16.mxu0 %v963_v49  ;;  %v893_v61 = vpop.f32.mrb[19].mxu1  ;;  %v934_v55 = vpop.f32.mrb[19].mxu0  ;;  %v948_v45 = vmax.f32 %v889_v40, 0.0  ;;  %v950_v46 = vmax.f32 %v930_v44, 0.0  ;;  %v1480_v40 = vld [vmem:[%s2644_s3 + $0x90] sm:$0xff] }
 0x326   :  { %1295 = vmatprep.subr.bf16.mxu1 %v1930_v53  ;;  %1335 = vmatprep.subr.bf16.mxu0 %v1932_v54  ;;  %v949_v31 = vmax.f32 %v891_v20, 0.0  ;;  %v951_v28 = vmax.f32 %v932_v22, 0.0  ;;  %v1584_v44 = vld [vmem:[%s2644_s3 + $0xd0] sm:$0xff] }
 0x327   :  { %v964_v10 = vpack.c.bf16 %v948_v45, %v948_v45  ;;  %v966_v47 = vpack.c.bf16 %v950_v46, %v950_v46  ;;  %v1702_v46 = vld [vmem:[%s2644_s3 + $0xa8] sm:$0xff] }
 0x328   :  { %v965_v35 = vpack.c.bf16 %v949_v31, %v949_v31  ;;  %v967_v36 = vpack.c.bf16 %v951_v28, %v951_v28 }
 0x32c   :  { %1296 = vmatpush1.bf16.xpose.msra.mxu1 %v1929_v9 }
 0x32d   :  { %1336 = vmatpush1.bf16.xpose.msra.mxu0 %v1931_v17  ;;  %1373 = vmatprep.subr.bf16.mxu1 %v1918_v18 }
 0x32e   :  { %1413 = vmatprep.subr.bf16.mxu0 %v1920_v19 }
 0x333   :  { %1326 = vmatmul.mubr.bf16.vlgmr.msra.gmra.mrb[28].mxu1 %v960_v32 }
 0x334   :  { %1366 = vmatmul.mubr.bf16.vlgmr.msra.gmra.mrb[28].mxu0 %v962_v25  ;;  %1374 = vmatpush1.bf16.xpose.msra.mxu1 %v1917_v29 }
 0x335   :  { %1405 = vmatprep.mubr.bf16.mxu1 %v965_v35  ;;  %1414 = vmatpush1.bf16.xpose.msra.mxu0 %v1919_v33 }
 0x336   :  { %1445 = vmatprep.mubr.bf16.mxu0 %v967_v36  ;;  %1375 = vmatprep.subr.bf16.mxu1 %v1934_v34 }
 0x337   :  { %1415 = vmatprep.subr.bf16.mxu0 %v1936_v26 }
 0x33c   :  { %1376 = vmatpush1.bf16.xpose.msra.mxu1 %v1933_v39  ;;  %v1479_v39 = vld [vmem:[%s2644_s3 + $0x88] sm:$0xff] }
 0x33d   :  { %1416 = vmatpush1.bf16.xpose.msra.mxu0 %v1935_v43  ;;  %2046 = vmatprep.subr.bf16.mxu1 %v2198_v0  ;;  %v2047_v43 = vpack.c.bf16 %v1480_v40, %v1479_v39 }
 0x33e   :  { %2049 = vmatprep.subr.bf16.mxu0 %v2198_v0 }
 0x343   :  { %1406 = vmatmul.mubr.bf16.vlgmr.msra.gmra.mrb[32].mxu1 %v964_v10  ;;  %v1703_v10 = vld [vmem:[%s2644_s3 + $0xb0] sm:$0xff] }
 0x344   :  { %1446 = vmatmul.mubr.bf16.vlgmr.msra.gmra.mrb[32].mxu0 %v966_v47  ;;  %2011 = vmatprep.mubr.msk.f32.mxu1 %vm2199_vm0, %v2200_v1  ;;  %v1481_v47 = vld [vmem:[%s2644_s3 + $0x98] sm:$0x3f] }
 0x345   :  { %2020 = vmatprep.mubr.msk.f32.mxu0 %vm2199_vm0, %v2200_v1  ;;  %2048 = vmatpush3.bf16.msra.mxu1 %v2047_v43 }
 0x346   :  { %2009 = vmatprep.subr.mxu1 %v2200_v1 }
 0x349   :  { %2010 = vmatpush3.msk.msra.mxu1 %vm58_vm1, %v1481_v47 }
 0x3e6   :  { %v1167_v63 = vpop.f32.mrb[20].mxu1  ;;  %v1207_v48 = vpop.f32.mrb[20].mxu0 }
 0x3e7   :  { %v1168_v49 = vadd.f32 %v1904_v42, %v1167_v63  ;;  %v1169_v50 = vpop.f32.mrb[21].mxu1  ;;  %v1209_v51 = vpop.f32.mrb[21].mxu0  ;;  %v2052_v42 = vpack.c.bf16 %v1703_v10, %v1702_v46  ;;  %v1585_v63 = vld [vmem:[%s2644_s3 + $0xd8] sm:$0x3f] }
 0x3e8   :  { %v1170_v0 = vpop.f32.mrb[22].mxu1  ;;  %v1210_v52 = vpop.f32.mrb[22].mxu0 }
 0x3e9   :  { %v1208_v53 = vadd.f32 %v1207_v48, %v1168_v49  ;;  %v1171_v54 = vpop.f32.mrb[23].mxu1  ;;  %v1211_v56 = vpop.f32.mrb[23].mxu0  ;;  %2053 = vmatprep.subr.bf16.mxu1 %v2052_v42  ;;  %v1937_v0 = vld [vmem:[%s2644_s3 + $0x78] ss:$0 sm:$0xff] }
 0x3ea   :  { %v1704_v54 = vld [vmem:[%s2644_s3 + $0xb8] sm:$0xff]  ;;  %v1705_v56 = vld [vmem:[%s2644_s3 + $0xc0] sm:$0xff] }
 0x3f6   :  { %v1247_v57 = vpop.f32.mrb[24].mxu1  ;;  %v1287_v58 = vpop.f32.mrb[24].mxu0 }
 0x3f7   :  { %v1248_v59 = vadd.f32 %v1247_v57, %v1208_v53  ;;  %v1249_v60 = vpop.f32.mrb[25].mxu1  ;;  %v1289_v61 = vpop.f32.mrb[25].mxu0  ;;  %v1938_v53 = vld [vmem:[%s2644_s3 + $0x80] ss:$0 sm:$0xff] }
 0x3f8   :  { %v1250_v55 = vpop.f32.mrb[26].mxu1  ;;  %v1290_v62 = vpop.f32.mrb[26].mxu0  ;;  %v1700_v60 = vld [vmem:[%s2643_s2] sm:$0xff]  ;;  %v1701_v61 = vld [vmem:[%s2643_s2 + $0x8] sm:$0x3]  ;;  %s2202_s2 = smov 1  }
 0x3f9   :  { %v1288_v2 = vadd.f32 %v1287_v58, %v1248_v59  ;;  %v1251_v3 = vpop.f32.mrb[27].mxu1  ;;  %v1291_v4 = vpop.f32.mrb[27].mxu0  ;;  %v2056_v59 = vpack.c.bf16 %v1705_v56, %v1704_v54  ;;  %v1676_v55 = vld [vmem:[%s2644_s3 + $0xe0] sm:$0x1f] }
 0x3fa   :  { %v1939_v62 = vld [vmem:[%s2644_s3 + $0xa0] ss:$0 sm:$0xff]  ;;  %v1680_v3 = vrot.slane %v1676_v55, %v2454_v11  ;;  %v1684_v4 = vrot.slane %v1676_v55, %v2465_v14 }
 0x3fc   :  { %v1697_v14 = vsel %vm1671_vm6, %v1680_v3, %v1684_v4 }
 0x406   :  { %v1327_v5 = vpop.f32.mrb[28].mxu1 }
 0x407   :  { %v1328_v6 = vadd.f32 %v1327_v5, %v1288_v2  ;;  %v1367_v8 = vpop.f32.mrb[28].mxu0  ;;  %v1329_v9 = vpop.f32.mrb[29].mxu1  ;;  %v1942_v2 = vld [vmem:[%s2644_s3 + $0xe8] ss:$0 sm:$0xff] }
 0x408   :  { %v1369_v16 = vpop.f32.mrb[29].mxu0  ;;  %v1330_v17 = vpop.f32.mrb[30].mxu1 }
 0x409   :  { %v1368_v18 = vadd.f32 %v1367_v8, %v1328_v6  ;;  %v1370_v13 = vpop.f32.mrb[30].mxu0  ;;  %v1331_v19 = vpop.f32.mrb[31].mxu1 }
 0x40a   :  { %v1371_v20 = vpop.f32.mrb[31].mxu0 }
 0x416   :  { %v1407_v22 = vpop.f32.mrb[32].mxu1 }
 0x417   :  { %v1408_v23 = vadd.f32 %v1407_v22, %v1368_v18  ;;  %v1447_v24 = vpop.f32.mrb[32].mxu0  ;;  %v1409_v31 = vpop.f32.mrb[33].mxu1  ;;  %v1688_v18 = vrot.slane %v1676_v55, %v2457_v12  ;;  %v1692_v22 = vrot.slane %v1676_v55, %v2468_v15 }
 0x418   :  { %v1449_v27 = vpop.f32.mrb[33].mxu0  ;;  %v1410_v28 = vpop.f32.mrb[34].mxu1  ;;  %v1696_v31 = vrot.slane %v1676_v55, %v2481_v41 }
 0x419   :  { %v1448_v29 = vadd.f32 %v1447_v24, %v1408_v23  ;;  %v1450_v30 = vpop.f32.mrb[34].mxu0  ;;  %v1411_v32 = vpop.f32.mrb[35].mxu1  ;;  %v1698_v24 = vsel %vm1673_vm7, %v1697_v14, %v1688_v18 }
 0x41a   :  { %v1451_v33 = vpop.f32.mrb[35].mxu0 }
 0x41b   :  { %v1453_v25 = vadd.f32 %v1448_v29, %v2375_v7  ;;  %v1583_v7 = vld [vmem:[%s2644_s3 + $0xc8] sm:$0xff]  ;;  %v1699_v29 = vsel %vm58_vm1, %v1698_v24, %v1692_v22 }
 0x41c   :  { %v2050_v45 = vpack.c.bf16 %v1584_v44, %v1583_v7 }
 0x41d   :  { %v1456_v34 = vsel %vm302_vm4, %v1453_v25, 0.0 }
 0x41e   :  { %1457 = vadd.xlane.f32.xlu1 %v1456_v34  ;;  %2051 = vmatpush3.bf16.msra.mxu0 %v2050_v45 }
 0x41f   :  { %2018 = vmatprep.subr.mxu0 %v2200_v1 }
 0x422   :  { %2019 = vmatpush3.msk.msra.mxu0 %vm58_vm1, %v1585_v63 }
 0x4ab   :  { %v1458_v35 = vpop.xlane.xlu1 %1457 }
 0x4ac   :  { %v1459_v26 = vmul.f32 0.045454547, %v1458_v35 }
 0x4ae   :  { %v1460_v36 = vsub.f32 %v1453_v25, %v1459_v26 }
 0x4b0   :  { %v1461_v37 = vmul.f32 %v1460_v36, %v1460_v36 }
 0x4b2   :  { %v1462_v38 = vsel %vm302_vm4, %v1461_v37, 0.0 }
 0x4b3   :  { %1463 = vadd.xlane.f32.xlu1 %v1462_v38 }
 0x540   :  { %v1464_v48 = vpop.xlane.xlu1 %1463 }
 0x541   :  { %v1465_v49 = vmul.f32 0.045454547, %v1464_v48 }
 0x543   :  { %v1466_v50 = vadd.f32 1e-05, %v1465_v49 }
 0x545   :  { %2109 = vrsqrt.f32 %v1466_v50 }
 0x54f   :  { %v2110_v51 = vpop.eup %2109 }
 0x550   :  { %v1468_v52 = vmul.f32 %v2110_v51, %v1460_v36 }
 0x552   :  { %v1473_v57 = vmul.f32 %v1937_v0, %v1468_v52 }
 0x554   :  { %v1478_v58 = vadd.f32 %v1938_v53, %v1473_v57 }
 0x556   :  { %2012 = vmatmul.mubr.msk.f32.vlgmr.msra.gmra.mrb[2].mxu1 %vm54_vm2, %v1478_v58  ;;  %2021 = vmatmul.mubr.msk.f32.vlgmr.msra.gmra.mrb[36].mxu0 %vm54_vm2, %v1478_v58 }
 0x557   :  { %2055 = vmatpush3.bf16.msra.mxu1 %v2052_v42  ;;  %2031 = vmatprep.mubr.msk.f32.mxu1 %vm132_vm3, %v1700_v60 }
 0x558   :  { %2057 = vmatprep.subr.bf16.mxu1 %v2056_v59 }
 0x55b   :  { %2059 = vmatpush3.bf16.msra.mxu1 %v2056_v59 }
 0x55e   :  { %2032 = vmatmul.mubr.msk.f32.vlgmr.msra.gmra.mrb[36].mxu1 %vm132_vm3, %v1701_v61 }
 0x629   :  { %v1559_v5 = vpop.f32.mrb[2].mxu1  ;;  %v1660_v6 = vpop.f32.mrb[36].mxu0 }
 0x62a   :  { %v2598_v8 = vadd.f32 %v1939_v62, %v1559_v5  ;;  %v1661_v9 = vadd.f32 %v1942_v2, %v1660_v6  ;;  %v2013_v16 = vpop.f32.mrb[3].mxu1  ;;  %v2022_v17 = vpop.f32.mrb[37].mxu0 }
 0x62c   :  { %1564 = vrot.lane.b32.xlu1 %v2598_v8, %s2202_s2  ;;  %1569 = vrot.lane.b32.xlu0 %v2598_v8, %s2203_s10  ;;  %v1665_v11 = vrot.slane %v1661_v9, 6  ;;  %v1667_v13 = vrot.slane %v1661_v9, 4  ;;  %v1669_v19 = vrot.slane %v1661_v9, 2 }
 0x62e   :  { %v1672_v20 = vsel %vm1671_vm6, %v1661_v9, %v1665_v11 }
 0x62f   :  { %v1674_v23 = vsel %vm1673_vm7, %v1672_v20, %v1667_v13 }
 0x630   :  { %v1675_v12 = vsel %vm58_vm1, %v1674_v23, %v1669_v19 }
 0x631   :  { %v2033_v27 = vpop.f32.mrb[36].mxu1 }
 0x632   :  { %v1784_v28 = vadd.f32 %v2033_v27, %v1661_v9  ;;  %v1778_v30 = vpop.f32.mrb[37].mxu1 }
 0x633   :  { %v1779_v32 = vadd.f32 %v1778_v30, %v1675_v12 }
 0x634   :  { %v1788_v33 = vadd.f32 %v1784_v28, %v1696_v31 }
 0x635   :  { %v1787_v25 = vadd.f32 %v1779_v32, %v1699_v29 }
 0x636   :  { %v1948_v34 = vmul.f32 -1.442695, %v1788_v33 }
 0x637   :  { %v1947_v35 = vmul.f32 -1.442695, %v1787_v25 }
 0x638   :  { %2111 = vpow2.f32 %v1948_v34 }
 0x639   :  { %2113 = vpow2.f32 %v1947_v35 }
 0x642   :  { %v2112_v26 = vpop.eup %2111 }
 0x643   :  { %v2114_v15 = vpop.eup %2113  ;;  %v1796_v36 = vadd.f32 1.0, %v2112_v26 }
 0x644   :  { %v1795_v37 = vadd.f32 1.0, %v2114_v15 }
 0x645   :  { %2115 = vrcp.f32 %v1796_v36 }
 0x646   :  { %2117 = vrcp.f32 %v1795_v37 }
 0x64f   :  { %v2116_v41 = vpop.eup %2115 }
 0x650   :  { %v2118_v38 = vpop.eup %2117  ;;  %v1803_v39 = vsel %vm1801_vm8, %v2116_v41, 0.0 }
 0x651   :  { %v1802_v40 = vsel %vm1801_vm8, %v2118_v38, 0.0  ;;  %1805 = vst [vmem:[#allocation5 + $0x8] sm:$0x3] %v1803_v39 }
 0x652   :  { %1804 = vst [vmem:[#allocation5] sm:$0xff] %v1802_v40 }
 0x69e   :  { %v1565_v43 = vpop.permute.xlu1 %1564  ;;  %v1570_v7 = vpop.permute.xlu0 %1569 }
 0x69f   :  { %v1572_v44 = vmax.f32 %v2598_v8, %v1570_v7  ;;  %vm1567_vm9 = vcmp.gt.f32.partialorder %v2598_v8, %v1565_v43 }
 0x6a0   :  { %v1568_v45 = vsel %vm1567_vm9, 1.0, %v2200_v1 }
 0x6a1   :  { %1574 = vrot.lane.b32.xlu1 %v1572_v44, %s2204_s11 }
 0x6a5   :  { %1579 = vrot.lane.b32.xlu1 %v1568_v45, %s2202_s2 }
 0x6a6   :  { %2156 = shalt.err (!%p2153_p12)
}
 0x6a7   :  { %s2157_s17 = scalar_lea.hbm %s2648_s7, 256 }
 0x6a8   :  { %p2158_p13 = scmp.ne.s32.totalorder %s2648_s7, %s2157_s17  ;;  %p2161_p0 = scmp.lt.u32.totalorder %s2157_s17, %s2648_s7 }
 0x6aa   :  { %p2163_p1 = pnand %p2161_p0, %p2158_p13 }
 0x6ac   :  { %2166 = shalt.err (!%p2163_p1)
}
 0x6ad   :  { %s2206_s20 = smov 128   ;;  %s2207_s6 = smov 8   ;;  %v1849_v47 = vld [vmem:[%s2644_s3 + $0x38] ss:$0 sm:$0xff]  ;;  %vm1810_vm11 = vcmask 97280   ;;  %vm1812_vm12 = vcmask 105472  }
 0x6ae   :  { %1826 = dma.vmem_to_hbm [thread:$0]  %s1821_s13, 256, %s2648_s7, [#allocation4], %s2206_s20, %s2206_s20, %s2207_s6   ;;  %v211_v42 = vadd.f32 %v1849_v47, %v2320_v21 }
 0x6af   :  { %s2208_s22 = smov 10   ;;  %s2209_s7 = smov [#allocation6]  }
 0x6b0   :  { %v1850_v63 = vmul.f32 -1.442695, %v211_v42  ;;  %s1833_s24 = sshll.u32 %s2209_s7, 4  ;;  %s1834_s24 = int_to_ptr.vmem [resolvable:$true] %s1833_s24 }
 0x6b1   :  { %s2167_s25 = scalar_lea.vmem %s1834_s24, 32  ;;  %p2172_p3 = scmp.lt.s32.totalorder %s1834_s24, %s1834_s24 }
 0x6b2   :  { %2119 = vpow2.f32 %v1850_v63  ;;  %p2168_p2 = scmp.ne.s32.totalorder %s1834_s24, %s2167_s25  ;;  %p2173_p4 = scmp.lt.s32.totalorder %s2167_s25, %s2167_s25 }
 0x6b4   :  { %p2174_p5 = por %p2173_p4, %p2172_p3 }
 0x6b6   :  { %p2175_p6 = pnand %p2174_p5, %p2168_p2 }
 0x6bc   :  { %v2120_v48 = vpop.eup %2119 }
 0x6bd   :  { %v215_v49 = vadd.f32 1.0, %v2120_v48 }
 0x6bf   :  { %2121 = vrcp.f32 %v215_v49 }
 0x6c9   :  { %v2122_v50 = vpop.eup %2121 }
 0x713   :  { %v1575_v1 = vpop.permute.xlu1 %1574 }
 0x714   :  { %vm1577_vm10 = vcmp.gt.f32.partialorder %v2598_v8, %v1575_v1 }
 0x717   :  { %v1580_v46 = vpop.permute.xlu1 %1579 }
 0x718   :  { %v1582_v10 = vsel %vm1577_vm10, 2.0, %v1580_v46 }
 0x719   :  { %1807 = vrot.lane.b32.xlu0 %v1582_v10, %s2208_s22 }
 0x78b   :  { %v1808_v51 = vpop.permute.xlu0 %1807 }
 0x78c   :  { %v1811_v0 = vsel %vm1810_vm11, %v2122_v50, %v1808_v51 }
 0x78d   :  { %v1813_v52 = vsel %vm1812_vm12, %v1811_v0, 0.0 }
 0x78e   :  { %1814 = vst [vmem:[#allocation6] sm:$0x3] %v1813_v52 }
 0x78f   :  { %2178 = shalt.err (!%p2175_p6)
}
 0x790   :  { %s2179_s27 = scalar_lea.hbm %s2649_s8, 32 }
 0x791   :  { %p2180_p7 = scmp.ne.s32.totalorder %s2649_s8, %s2179_s27  ;;  %p2183_p8 = scmp.lt.u32.totalorder %s2179_s27, %s2649_s8 }
 0x793   :  { %p2185_p9 = pnand %p2183_p8, %p2180_p7 }
 0x795   :  { %2188 = shalt.err (!%p2185_p9)
}
 0x796   :  { %1836 = dma.vmem_to_hbm [thread:$0]  %s1834_s24, 32, %s2649_s8, [#allocation7]  }
 0x797   :  { %2191 = dma.done.wait [#allocation4], 256  }
 0x798   :  { %2192 = vsyncadd [#allocation4], 4294967040 }
 0x799   :  { %2193 = dma.done.wait [#allocation7], 32  }
 0x79a   :  { %2194 = vsyncadd [#allocation7], 4294967264 }
 0x79b   :  { %1843 = vsyncpa [#allocation3], 1 }
 0x79c   :  { %1844 = vsyncpa [#allocation4], 1 }
 0x79d   :  { %1845 = vsyncpa [#allocation7], 1 }

</bundles_post_ra>
